<compile_context>
chip_gen: v6e
topology: v6e:2x2x1
jax: 0.10.0
libtpu: 0.0.40
codegen_flags: <defaults>
</compile_context>

<pallas_src>
import math
from functools import partial

import jax
import jax.numpy as jnp
from jax.experimental import pallas as pl
from jax.experimental.pallas import tpu as pltpu


def _round_up(a, m):
    return (a + m - 1) // m * m


def _pick_l_tile(c_in_pad, c_out, k, stride, dilation, cbytes,
                 budget_bytes=20 * 1024 * 1024):
    """Largest lane-dense L tile whose working set fits a conservative VMEM budget
    (sized against v7x's smaller VMEM)."""
    for lt in (2048, 1024, 512, 256, 128):
        in_tile = _round_up(lt * stride + (k - 1) * dilation, 128)
        need = (
            2 * c_in_pad * in_tile * cbytes                     # double-buffered x window
            + k * c_in_pad * lt * cbytes                        # im2col slab
            + 2 * c_out * lt * 4                                # double-buffered f32 out tile
            + c_out * _round_up(k * c_in_pad, 128) * cbytes     # resident weight
            + 2 * c_out * lt * 4                                # accumulator headroom
        )
        if need <= budget_bytes:
            return lt
    return 128


def _pine_conv_kernel(
    x_hbm, w_ref, b_ref, o_ref, xbuf, slab, sem,
    *, K, dilation, stride, L_TILE, IN_TILE, C_IN_PAD, NJ,
):
    """One (batch, L-tile) per grid step.

    x_hbm : (B, C_in_pad, L_total)     bf16, HBM (manual DMA)
    w_ref : (C_out, K*C_in_pad)        bf16, resident VMEM
    b_ref : (C_out, 1)                 f32,  resident VMEM
    o_ref : (1, C_out, L_TILE)         f32,  auto-pipelined VMEM
    xbuf  : (2, C_in_pad, IN_TILE)     bf16, double-buffered input window
    slab  : (K*C_in_pad, L_TILE)       bf16, im2col scratch
    sem   : DMA semaphores, shape (2,)
    """
    b = pl.program_id(0)
    j = pl.program_id(1)
    slot = j % 2

    def issue(batch_idx, tile_idx, slt):
        start = tile_idx * (L_TILE * stride)
        pltpu.make_async_copy(
            x_hbm.at[batch_idx, :, pl.ds(start, IN_TILE)],
            xbuf.at[slt],
            sem.at[slt],
        ).start()

    # Prime the pipeline at the start of each batch row.  The prefetch state only
    # spans the inner (sequential, "arbitrary") L axis, so this is safe even when
    # the B axis is split across TensorCores.
    @pl.when(j == 0)
    def _():
        issue(b, j, slot)

    # Prefetch the next L tile of this batch row into the other buffer.
    @pl.when(j + 1 < NJ)
    def _():
        issue(b, j + 1, 1 - slot)

    # Wait for the current tile's input window.
    pltpu.make_async_copy(
        x_hbm.at[b, :, pl.ds(j * (L_TILE * stride), IN_TILE)],
        xbuf.at[slot],
        sem.at[slot],
    ).wait()

    # Build the im2col slab: K shifted (and strided) views of the input window,
    # stacked along the contraction dim.  C_IN_PAD is a sublane-tile multiple, so
    # every tap block lands on an aligned sublane offset.
    cur = xbuf.at[slot]
    for t in range(K):
        if stride == 1:
            xt = cur[:, pl.ds(t * dilation, L_TILE)]
        else:
            xt = cur[:, pl.ds(t * dilation, L_TILE, stride=stride)]
        slab[pl.ds(t * C_IN_PAD, C_IN_PAD), :] = xt

    # Single MXU matmul (bf16 operands, f32 accumulation), bias epilogue.
    acc = jnp.dot(w_ref[...], slab[...], preferred_element_type=jnp.float32)
    o_ref[0, :, :] = (acc + b_ref[...]).astype(o_ref.dtype)


def pine_conv_net(x, weight, bias, *, kernel_size, dilation=1, stride=1,
                  compute_dtype=jnp.bfloat16, l_tile=None):
    """Pallas equivalent of PineConvNet.forward (groups=1)."""
    B, C_in, L = x.shape
    C_out, C_in_w, K = weight.shape
    assert C_in_w == C_in and K == kernel_size

    # ---- padding logic (integer-safe get_extra_padding_for_conv1d / pad1d) ----
    eff_k = (kernel_size - 1) * dilation + 1
    pad = eff_k - stride
    n_frames_ceil = -(-(L - eff_k + pad) // stride)        # ceil((L-eff_k+pad)/stride)
    ideal_length = n_frames_ceil * stride + (eff_k - pad)
    extra_padding = ideal_length - L
    L_out = (L + pad + extra_padding - eff_k) // stride + 1

    # ---- tiling / layout preparation ----
    cbytes = jnp.dtype(compute_dtype).itemsize
    sub = 16 if cbytes == 2 else 8                         # sublane tile height
    C_in_pad = _round_up(max(C_in, 1), sub)

    if l_tile is None:
        l_tile = _pick_l_tile(C_in_pad, C_out, K, stride, dilation, cbytes)
    l_tile = min(l_tile, _round_up(L_out, 128))
    NJ = pl.cdiv(L_out, l_tile)
    L_out_pad = NJ * l_tile

    in_tile = _round_up(l_tile * stride + (K - 1) * dilation, 128)
    L_total = (NJ - 1) * l_tile * stride + in_tile
    right_pad = L_total - (L + pad)
    # guards: padding covers the module's extra padding, and every in-kernel read
    # stays inside the DMA'd window (OOB VMEM reads are not runtime-checked).
    assert right_pad >= extra_padding >= 0, (right_pad, extra_padding)
    assert (K - 1) * dilation + (l_tile - 1) * stride < in_tile

    x_prep = jnp.pad(
        x.astype(compute_dtype),
        ((0, 0), (0, C_in_pad - C_in), (pad, right_pad)),
    )

    # weight -> (C_out, K*C_in_pad), row order matching the im2col slab
    w2 = jnp.pad(weight, ((0, 0), (0, C_in_pad - C_in), (0, 0)))
    w2 = jnp.transpose(w2, (0, 2, 1)).reshape(C_out, K * C_in_pad)
    w2 = w2.astype(compute_dtype)

    bias2d = bias.astype(jnp.float32).reshape(C_out, 1)

    kernel = partial(
        _pine_conv_kernel,
        K=K, dilation=dilation, stride=stride,
        L_TILE=l_tile, IN_TILE=in_tile, C_IN_PAD=C_in_pad, NJ=NJ,
    )

    out = pl.pallas_call(
        kernel,
        out_shape=jax.ShapeDtypeStruct((B, C_out, L_out_pad), jnp.float32),
        grid_spec=pltpu.PrefetchScalarGridSpec(
            num_scalar_prefetch=0,
            grid=(B, NJ),
            in_specs=[
                pl.BlockSpec(memory_space=pl.ANY),                          # x: stays in HBM
                pl.BlockSpec((C_out, K * C_in_pad), lambda b, j: (0, 0)),   # resident weight
                pl.BlockSpec((C_out, 1), lambda b, j: (0, 0)),              # resident bias
            ],
            out_specs=pl.BlockSpec((1, C_out, l_tile), lambda b, j: (b, 0, j)),
            scratch_shapes=[
                pltpu.VMEM((2, C_in_pad, in_tile), compute_dtype),   # double-buffered window
                pltpu.VMEM((K * C_in_pad, l_tile), compute_dtype),   # im2col slab
                pltpu.SemaphoreType.DMA((2,)),
            ],
        ),
        compiler_params=pltpu.CompilerParams(
            dimension_semantics=("parallel", "arbitrary"),
            vmem_limit_bytes=32 * 1024 * 1024,
        ),
    )(x_prep, w2, bias2d)

    return out[:, :, :L_out]


def _reference_conv(x, weight, bias, *, kernel_size, dilation=1, stride=1):
    """Plain-JAX reference (same padding + lax conv) for validation."""
    eff_k = (kernel_size - 1) * dilation + 1
    pad = eff_k - stride
    L = x.shape[-1]
    n_frames_ceil = -(-(L - eff_k + pad) // stride)
    ideal_length = n_frames_ceil * stride + (eff_k - pad)
    extra = ideal_length - L
    x_pad = jnp.pad(x, ((0, 0), (0, 0), (pad, extra)))
    y = jax.lax.conv_general_dilated(
        x_pad, weight,
        window_strides=(stride,),
        padding="VALID",
        rhs_dilation=(dilation,),
        dimension_numbers=("NCH", "OIH", "NCH"),
    )
    return y + bias[None, :, None]


if __name__ == "__main__":
    def run_case(B, C_in, C_out, L, kernel_size, dilation, stride, l_tile=None, seed=0):
        key = jax.random.PRNGKey(seed)
        kx, kw, kb = jax.random.split(key, 3)
        x = jax.random.normal(kx, (B, C_in, L), dtype=jnp.float32)

        # PyTorch Conv1d default init: U(-1/sqrt(fan_in), 1/sqrt(fan_in))
        fan_in = C_in * kernel_size
        bound = 1.0 / math.sqrt(fan_in)
        weight = jax.random.uniform(
            kw, (C_out, C_in, kernel_size), jnp.float32, -bound, bound)
        bias = jax.random.uniform(kb, (C_out,), jnp.float32, -bound, bound)

        out = pine_conv_net(
            x, weight, bias, kernel_size=kernel_size,
            dilation=dilation, stride=stride, l_tile=l_tile)
        out = jax.block_until_ready(out)

        # Kernel multiplies bf16 operands with f32 accumulation -> compare against
        # a lax reference evaluated on bf16-rounded operands.
        x_bf = x.astype(jnp.bfloat16).astype(jnp.float32)
        w_bf = weight.astype(jnp.bfloat16).astype(jnp.float32)
        ref = _reference_conv(
            x_bf, w_bf, bias, kernel_size=kernel_size,
            dilation=dilation, stride=stride)

        assert out.shape == ref.shape, (out.shape, ref.shape)
        err = float(jnp.max(jnp.abs(out - ref)))
        assert jnp.allclose(out, ref, atol=1e-4, rtol=1e-4), f"max abs err {err}"

    # demo-scale config matching the module defaults
    run_case(B=2, C_in=4, C_out=8, L=16, kernel_size=3, dilation=1, stride=1)
    # multi-tile config exercising the double-buffered L tiling + dilation
    run_case(B=2, C_in=3, C_out=6, L=300, kernel_size=5, dilation=2, stride=1,
             l_tile=128, seed=1)

    print("KERNEL_OK")
</pallas_src>

<mosaic_0001>
module attributes {stable_mosaic.version = 11 : i64} {
  func.func @_pine_conv_kernel(%arg0: i32, %arg1: i32, %arg2: memref<2x16x256xbf16, #tpu.memory_space<any>>, %arg3: memref<8x48xbf16, #tpu.memory_space<vmem>>, %arg4: memref<8x1xf32, #tpu.memory_space<vmem>>, %arg5: memref<1x8x128xf32, #tpu.memory_space<vmem>>, %arg6: memref<2x16x256xbf16, #tpu.memory_space<vmem>>, %arg7: memref<48x128xbf16, #tpu.memory_space<vmem>>, %arg8: memref<2x!tpu.dma_semaphore, #tpu.memory_space<semaphore_mem>>) attributes {dimension_semantics = [#tpu.dimension_semantics<parallel>, #tpu.dimension_semantics<arbitrary>], iteration_bounds = array<i64: 2, 1>, scalar_prefetch = 0 : i64, scratch_operands = 3 : i64, tpu.core_type = #tpu.core_type<tc>, window_params = [{}, {pipeline_mode = #tpu.pipeline_mode<synchronous>, transform_indices = @transform_1, window_bounds = array<i64: 8, 48>}, {pipeline_mode = #tpu.pipeline_mode<synchronous>, transform_indices = @transform_2, window_bounds = array<i64: 8, 1>}, {transform_indices = @transform_3, window_bounds = array<i64: 1, 8, 128>}]} {
    %c2_i32 = arith.constant 2 : i32
    %c0_i32 = arith.constant 0 : i32
    %0 = arith.cmpi eq, %c2_i32, %c0_i32 : i32
    %c1_i32 = arith.constant 1 : i32
    %1 = arith.select %0, %c1_i32, %c2_i32 : i32
    %2 = arith.remsi %arg1, %1 : i32
    %c0_i32_0 = arith.constant 0 : i32
    %3 = arith.cmpi ne, %2, %c0_i32_0 : i32
    %c0_i32_1 = arith.constant 0 : i32
    %4 = arith.cmpi slt, %2, %c0_i32_1 : i32
    %c0_i32_2 = arith.constant 0 : i32
    %5 = arith.cmpi slt, %1, %c0_i32_2 : i32
    %6 = arith.xori %4, %5 : i1
    %7 = arith.andi %6, %3 : i1
    %8 = arith.addi %2, %1 : i32
    %9 = arith.select %7, %8, %2 : i32
    %c0_i32_3 = arith.constant 0 : i32
    %10 = arith.cmpi eq, %arg1, %c0_i32_3 : i32
    %11 = arith.extui %10 : i1 to i32
    %c0_i32_4 = arith.constant 0 : i32
    %12 = arith.cmpi ne, %11, %c0_i32_4 : i32
    scf.if %12 {
      %c128_i32_33 = arith.constant 128 : i32
      %45 = arith.muli %arg1, %c128_i32_33 : i32
      %c0_i32_34 = arith.constant 0 : i32
      %46 = tpu.memref_slice %arg2[%arg0, %c0_i32_34, %45] : memref<2x16x256xbf16, #tpu.memory_space<any>> -> memref<1x16x256xbf16, #tpu.memory_space<any>>
      %47 = tpu.memref_squeeze %46 : memref<1x16x256xbf16, #tpu.memory_space<any>> -> memref<16x256xbf16, #tpu.memory_space<any>>
      %c0_i32_35 = arith.constant 0 : i32
      %c0_i32_36 = arith.constant 0 : i32
      %48 = tpu.memref_slice %arg6[%9, %c0_i32_35, %c0_i32_36] : memref<2x16x256xbf16, #tpu.memory_space<vmem>> -> memref<1x16x256xbf16, #tpu.memory_space<vmem>>
      %49 = tpu.memref_squeeze %48 : memref<1x16x256xbf16, #tpu.memory_space<vmem>> -> memref<16x256xbf16, #tpu.memory_space<vmem>>
      %50 = tpu.memref_slice %arg8[%9] : memref<2x!tpu.dma_semaphore, #tpu.memory_space<semaphore_mem>> -> memref<1x!tpu.dma_semaphore, #tpu.memory_space<semaphore_mem>>
      %51 = tpu.memref_squeeze %50 : memref<1x!tpu.dma_semaphore, #tpu.memory_space<semaphore_mem>> -> memref<!tpu.dma_semaphore, #tpu.memory_space<semaphore_mem>>
      tpu.enqueue_dma source(%47 : memref<16x256xbf16, #tpu.memory_space<any>>) target(%49 : memref<16x256xbf16, #tpu.memory_space<vmem>>) target_semaphore(%51 : memref<!tpu.dma_semaphore, #tpu.memory_space<semaphore_mem>>)
    } else {
    }
    %c1_i32_5 = arith.constant 1 : i32
    %13 = arith.addi %arg1, %c1_i32_5 : i32
    %c1_i32_6 = arith.constant 1 : i32
    %14 = arith.cmpi slt, %13, %c1_i32_6 : i32
    %15 = arith.extui %14 : i1 to i32
    %c0_i32_7 = arith.constant 0 : i32
    %16 = arith.cmpi ne, %15, %c0_i32_7 : i32
    scf.if %16 {
      %c1_i32_33 = arith.constant 1 : i32
      %45 = arith.addi %arg1, %c1_i32_33 : i32
      %c1_i32_34 = arith.constant 1 : i32
      %46 = arith.subi %c1_i32_34, %9 : i32
      %c128_i32_35 = arith.constant 128 : i32
      %47 = arith.muli %45, %c128_i32_35 : i32
      %c0_i32_36 = arith.constant 0 : i32
      %48 = tpu.memref_slice %arg2[%arg0, %c0_i32_36, %47] : memref<2x16x256xbf16, #tpu.memory_space<any>> -> memref<1x16x256xbf16, #tpu.memory_space<any>>
      %49 = tpu.memref_squeeze %48 : memref<1x16x256xbf16, #tpu.memory_space<any>> -> memref<16x256xbf16, #tpu.memory_space<any>>
      %c0_i32_37 = arith.constant 0 : i32
      %c0_i32_38 = arith.constant 0 : i32
      %50 = tpu.memref_slice %arg6[%46, %c0_i32_37, %c0_i32_38] : memref<2x16x256xbf16, #tpu.memory_space<vmem>> -> memref<1x16x256xbf16, #tpu.memory_space<vmem>>
      %51 = tpu.memref_squeeze %50 : memref<1x16x256xbf16, #tpu.memory_space<vmem>> -> memref<16x256xbf16, #tpu.memory_space<vmem>>
      %52 = tpu.memref_slice %arg8[%46] : memref<2x!tpu.dma_semaphore, #tpu.memory_space<semaphore_mem>> -> memref<1x!tpu.dma_semaphore, #tpu.memory_space<semaphore_mem>>
      %53 = tpu.memref_squeeze %52 : memref<1x!tpu.dma_semaphore, #tpu.memory_space<semaphore_mem>> -> memref<!tpu.dma_semaphore, #tpu.memory_space<semaphore_mem>>
      tpu.enqueue_dma source(%49 : memref<16x256xbf16, #tpu.memory_space<any>>) target(%51 : memref<16x256xbf16, #tpu.memory_space<vmem>>) target_semaphore(%53 : memref<!tpu.dma_semaphore, #tpu.memory_space<semaphore_mem>>)
    } else {
    }
    %c128_i32 = arith.constant 128 : i32
    %17 = arith.muli %arg1, %c128_i32 : i32
    %c0_i32_8 = arith.constant 0 : i32
    %18 = tpu.memref_slice %arg2[%arg0, %c0_i32_8, %17] : memref<2x16x256xbf16, #tpu.memory_space<any>> -> memref<1x16x256xbf16, #tpu.memory_space<any>>
    %19 = tpu.memref_squeeze %18 : memref<1x16x256xbf16, #tpu.memory_space<any>> -> memref<16x256xbf16, #tpu.memory_space<any>>
    %c0_i32_9 = arith.constant 0 : i32
    %c0_i32_10 = arith.constant 0 : i32
    %20 = tpu.memref_slice %arg6[%9, %c0_i32_9, %c0_i32_10] : memref<2x16x256xbf16, #tpu.memory_space<vmem>> -> memref<1x16x256xbf16, #tpu.memory_space<vmem>>
    %21 = tpu.memref_squeeze %20 : memref<1x16x256xbf16, #tpu.memory_space<vmem>> -> memref<16x256xbf16, #tpu.memory_space<vmem>>
    %22 = tpu.memref_slice %arg8[%9] : memref<2x!tpu.dma_semaphore, #tpu.memory_space<semaphore_mem>> -> memref<1x!tpu.dma_semaphore, #tpu.memory_space<semaphore_mem>>
    %23 = tpu.memref_squeeze %22 : memref<1x!tpu.dma_semaphore, #tpu.memory_space<semaphore_mem>> -> memref<!tpu.dma_semaphore, #tpu.memory_space<semaphore_mem>>
    tpu.wait_dma2 semaphore(%23 : memref<!tpu.dma_semaphore, #tpu.memory_space<semaphore_mem>>) src(%19 : memref<16x256xbf16, #tpu.memory_space<any>>) dst(%21 : memref<16x256xbf16, #tpu.memory_space<vmem>>)
    %c0_i32_11 = arith.constant 0 : i32
    %c0_i32_12 = arith.constant 0 : i32
    %24 = tpu.memref_slice %arg6[%9, %c0_i32_11, %c0_i32_12] : memref<2x16x256xbf16, #tpu.memory_space<vmem>> -> memref<1x16x256xbf16, #tpu.memory_space<vmem>>
    %25 = tpu.memref_squeeze %24 : memref<1x16x256xbf16, #tpu.memory_space<vmem>> -> memref<16x256xbf16, #tpu.memory_space<vmem>>
    %c0 = arith.constant 0 : index
    %c0_13 = arith.constant 0 : index
    %26 = vector.load %25[%c0, %c0_13] : memref<16x256xbf16, #tpu.memory_space<vmem>>, vector<16x128xbf16>
    %c0_14 = arith.constant 0 : index
    %c0_15 = arith.constant 0 : index
    %27 = vector.load %arg7[%c0_14, %c0_15] : memref<48x128xbf16, #tpu.memory_space<vmem>>, vector<16x128xbf16>
    tpu.vector_store %arg7[%c0_14, %c0_15], %26 {strides = array<i32>} : memref<48x128xbf16, #tpu.memory_space<vmem>>, vector<16x128xbf16>,
    %c0_i32_16 = arith.constant 0 : i32
    %c0_i32_17 = arith.constant 0 : i32
    %28 = tpu.memref_slice %arg6[%9, %c0_i32_16, %c0_i32_17] : memref<2x16x256xbf16, #tpu.memory_space<vmem>> -> memref<1x16x256xbf16, #tpu.memory_space<vmem>>
    %29 = tpu.memref_squeeze %28 : memref<1x16x256xbf16, #tpu.memory_space<vmem>> -> memref<16x256xbf16, #tpu.memory_space<vmem>>
    %c0_18 = arith.constant 0 : index
    %c1 = arith.constant 1 : index
    %30 = vector.load %29[%c0_18, %c1] : memref<16x256xbf16, #tpu.memory_space<vmem>>, vector<16x128xbf16>
    %c16 = arith.constant 16 : index
    %c0_19 = arith.constant 0 : index
    %31 = vector.load %arg7[%c16, %c0_19] : memref<48x128xbf16, #tpu.memory_space<vmem>>, vector<16x128xbf16>
    tpu.vector_store %arg7[%c16, %c0_19], %30 {strides = array<i32>} : memref<48x128xbf16, #tpu.memory_space<vmem>>, vector<16x128xbf16>,
    %c0_i32_20 = arith.constant 0 : i32
    %c0_i32_21 = arith.constant 0 : i32
    %32 = tpu.memref_slice %arg6[%9, %c0_i32_20, %c0_i32_21] : memref<2x16x256xbf16, #tpu.memory_space<vmem>> -> memref<1x16x256xbf16, #tpu.memory_space<vmem>>
    %33 = tpu.memref_squeeze %32 : memref<1x16x256xbf16, #tpu.memory_space<vmem>> -> memref<16x256xbf16, #tpu.memory_space<vmem>>
    %c0_22 = arith.constant 0 : index
    %c2 = arith.constant 2 : index
    %34 = vector.load %33[%c0_22, %c2] : memref<16x256xbf16, #tpu.memory_space<vmem>>, vector<16x128xbf16>
    %c32 = arith.constant 32 : index
    %c0_23 = arith.constant 0 : index
    %35 = vector.load %arg7[%c32, %c0_23] : memref<48x128xbf16, #tpu.memory_space<vmem>>, vector<16x128xbf16>
    tpu.vector_store %arg7[%c32, %c0_23], %34 {strides = array<i32>} : memref<48x128xbf16, #tpu.memory_space<vmem>>, vector<16x128xbf16>,
    %c0_24 = arith.constant 0 : index
    %c0_25 = arith.constant 0 : index
    %36 = vector.load %arg3[%c0_24, %c0_25] : memref<8x48xbf16, #tpu.memory_space<vmem>>, vector<8x48xbf16>
    %c0_26 = arith.constant 0 : index
    %c0_27 = arith.constant 0 : index
    %37 = vector.load %arg7[%c0_26, %c0_27] : memref<48x128xbf16, #tpu.memory_space<vmem>>, vector<48x128xbf16>
    %cst = arith.constant dense<0.000000e+00> : vector<8x128xf32>
    %38 = tpu.matmul %36, %37, %cst {dimension_numbers = #tpu.dot_dimension_numbers<[1], [0], [0], [1], [0, 0, 1, 1], [], []>} : vector<8x48xbf16>, vector<48x128xbf16>, vector<8x128xf32> -> vector<8x128xf32>
    %c0_28 = arith.constant 0 : index
    %c0_29 = arith.constant 0 : index
    %39 = vector.load %arg4[%c0_28, %c0_29] : memref<8x1xf32, #tpu.memory_space<vmem>>, vector<8x1xf32>
    %40 = vector.broadcast %39 : vector<8x1xf32> to vector<8x128xf32>
    %41 = arith.addf %38, %40 : vector<8x128xf32>
    %c0_30 = arith.constant 0 : index
    %c0_31 = arith.constant 0 : index
    %c0_32 = arith.constant 0 : index
    %42 = vector.load %arg5[%c0_30, %c0_31, %c0_32] : memref<1x8x128xf32, #tpu.memory_space<vmem>>, vector<1x8x128xf32>
    %43 = vector.shape_cast %42 : vector<1x8x128xf32> to vector<8x128xf32>
    %44 = vector.shape_cast %41 : vector<8x128xf32> to vector<1x8x128xf32>
    tpu.vector_store %arg5[%c0_30, %c0_31, %c0_32], %44 {strides = array<i32>} : memref<1x8x128xf32, #tpu.memory_space<vmem>>, vector<1x8x128xf32>,
    return
  }
  func.func @transform_1(%arg0: i32, %arg1: i32) -> (i32, i32) {
    %c0_i32 = arith.constant 0 : i32
    %c0_i32_0 = arith.constant 0 : i32
    %c0_i32_1 = arith.constant 0 : i32
    return %c0_i32, %c0_i32_0 : i32, i32
  }
  func.func @transform_2(%arg0: i32, %arg1: i32) -> (i32, i32) {
    %c0_i32 = arith.constant 0 : i32
    %c0_i32_0 = arith.constant 0 : i32
    %c0_i32_1 = arith.constant 0 : i32
    return %c0_i32, %c0_i32_0 : i32, i32
  }
  func.func @transform_3(%arg0: i32, %arg1: i32) -> (i32, i32, i32) {
    %c0_i32 = arith.constant 0 : i32
    %c0_i32_0 = arith.constant 0 : i32
    return %arg0, %c0_i32, %arg1 : i32, i32, i32
  }
}

</mosaic_0001>

<bundles_post_ra>
// kernel: tpu_custom_call.1
= control target key start
LH: loop header
LB: loop body
LE: loop exit
PB: predicated region body
PF: predicated region fallthrough
CT: control target
= control target key end

     0   :  { %8 = vsyncpa [#allocation6], 0  ;;  %s790_s0 = inlined_call_operand.hbm [shape: bf16[2,16,256], index: 0, kind: input, shape index: {}]   ;;  %s791_s1 = inlined_call_operand.vmem [shape: bf16[8,48], index: 1, kind: input, shape index: {}]   ;;  %s792_s2 = inlined_call_operand.vmem [shape: f32[8,1], index: 2, kind: input, shape index: {}]   ;;  %s793_s3 = inlined_call_operand.hbm [shape: f32[2,8,128], index: 3, kind: output, shape index: {}]  }
   0x1   :  { %10 = vsyncpa [#allocation6 + $0x1], 0  ;;  %s657_s12 = smov 0   ;;  %s659_s13 = smov 0  }
   0x2   :  { %s661_s14 = smov 0   ;;  %s663_s15 = smov 0  }
   0x3   :  { %s665_s16 = smov 0   ;;  %s667_s17 = smov 0  }
   0x4 LB: > { %s427_s18 = sadd.s32 4294967295, %s628_s17   ;;  %s428_s19 = sadd.s32 4294967294, %s628_s17   ;;  %s628_s17 = sphi %s667_s17, %s16_s17   ;;  %s624_s16 = sphi %s665_s16, %s800_s16   ;;  %s620_s15 = sphi %s663_s15, %s799_s15   ;;  %s616_s14 = sphi %s661_s14, %s798_s14   ;;  %s612_s13 = sphi %s659_s13, %s797_s13   ;;  %s608_s12 = sphi %s657_s12, %s796_s12  }
   0x5   : > { %s28_s20 = sadd.s32 1, %s624_s16  ;;  %s79_s21 = sadd.s32 1, %s616_s14 }
   0x6   : > { %p30_p0 = scmp.ge.s32.totalorder %s28_s20, 2  ;;  %p89_p1 = scmp.ne.s32.totalorder %s616_s14, %s612_s13 }
   0x7   : > { %p90_p2 = scmp.eq.s32.totalorder %s427_s18, 1  ;;  %p95_p3 = scmp.ne.s32.totalorder %s612_s13, %s608_s12 }
   0x8   : > { %s802_s20 = smov (%p30_p0, %s28_s20), 0  ;;  %p96_p5 = scmp.eq.s32.totalorder %s428_s19, 1 }
   0x9   : > { %p697_p4 = por %p90_p2, %p89_p1  ;;  %s74_s23 = ssub.s32 %s624_s16, %s802_s20 }
   0xa   : > { %p430_p6 = scmp.ge.s32.totalorder %s628_s17, 1  ;;  %p77_p7 = scmp.eq.s32.totalorder %s74_s23, 0 }
   0xb   : > { %p704_p8 = por %p96_p5, %p95_p3  ;;  %p120_p9 = scmp.lt.s32.totalorder %s628_s17, 3 }
   0xc   : > { %s710_s25 = scalar_select %p77_p7, %s616_s14, %s79_s21  }
   0xd   : > { %p121_p10 = pnand %p430_p6, %p120_p9 }
   0xe   : > { %s134_s26 = sand.u32 (!%p121_p10), 1, %s612_s13   ;;  %s446_s27 = sshll.u32 (!%p121_p10), %s620_s15, 8 }
   0xf   : > { %124 = sbr.rel (%p121_p10) target bundleno = 389 (0x185), region = 28  ;;  %s716_s28 = sshll.u32 (!%p121_p10), %s134_s26, 3 }
  0x10   : > { %s160_s4 = scalar_lea.hbm (!%p121_p10), %s790_s0, %s446_s27  ;;  %s630_s5 = smov (!%p121_p10), [#allocation2]  }
  0x11   : > { %s172_s6 = sshll.u32 (!%p121_p10), %s630_s5, 4  ;;  %s528_s7 = scalar_lea.hbm (!%p121_p10), %s160_s4, 256  ;;  %s173_s6 = int_to_ptr.vmem [resolvable:$true] %s172_s6 }
  0x12   : > { %p529_p11 = scmp.ne.s32.totalorder (!%p121_p10), %s160_s4, %s528_s7  ;;  %s530_s10 = scalar_lea.hbm (!%p121_p10), %s790_s0, 512 }
  0x13   : > { %p531_p12 = scmp.lt.s32.totalorder (!%p121_p10), %s160_s4, %s790_s0  ;;  %p532_p13 = scmp.lt.s32.totalorder (!%p121_p10), %s530_s10, %s528_s7 }
  0x15   : > { %p533_p0 = por %p532_p13, %p531_p12 }
  0x17   : > { %p534_p1 = pnand %p533_p0, %p529_p11 }
  0x19   : > { %537 = shalt.err (!%p534_p1)  }
  0x1a   : > { %s538_s19 = scalar_lea.vmem %s173_s6, 256  ;;  %s542_s21 = scalar_lea.vmem %s173_s6, 512 }
  0x1b   : > { %p539_p2 = scmp.ne.s32.totalorder %s173_s6, %s538_s19  ;;  %p543_p3 = scmp.lt.s32.totalorder %s173_s6, %s173_s6 }
  0x1c   : > { %p544_p5 = scmp.lt.s32.totalorder %s542_s21, %s538_s19 }
  0x1e   : > { %p545_p6 = por %p544_p5, %p543_p3 }
  0x20   : > { %p546_p7 = pnand %p545_p6, %p539_p2 }
  0x22   : > { %549 = shalt.err (!%p546_p7)  }
  0x23   : > { %175 = dma.hbm_to_vmem [thread:$0]  %s160_s4, 256, %s173_s6, [#allocation4] }
  0x24   : > { %s136_s23 = scalar_lea.vmem [#allocation5], %s716_s28 }
  0x25   : > { %600 = dma.done.wait [#allocation4], 256 }
  0x26   : > { %601 = vsyncadd [#allocation4], 4294967040  ;;  %v631_v0 = vmov 0.0   ;;  %v233_v1 = vld [vmem:[#allocation2] sm:$0xff]  ;;  %s632_s27 = smov 126   ;;  %s633_s29 = smov 127  }
  0x27   : > { %453 = vmatprep.subr.bf16.mxu0 %v631_v0  ;;  %237 = vrot.lane.b32.xlu0 %v233_v1, %s632_s27  ;;  %v234_v2 = vld [vmem:[#allocation2 + $0x8] sm:$0xff]  ;;  %v212_v3 = vld [vmem:[#allocation2] sm:$0xf]  ;;  %vm634_vm0 = vmmov 0   ;;  %v635_v6 = vmov 0   ;;  %vm243_vm1 = vcmask 1031168  }
  0x28   : > { %220 = vrot.lane.b32.xlu1 %v233_v1, %s633_s29  ;;  %v213_v4 = vld [vmem:[#allocation2 + $0x8] sm:$0xf]  ;;  %214 = vst [vmem:[#allocation3] sm:$0xf] %v212_v3  ;;  %459 = vmatprep.mubr.msk.bf16.mxu0 %vm634_vm0, %v631_v0  ;;  %v257_v5 = vld [vmem:[%s792_s2] sm:$0xff]  ;;  %vm226_vm2 = vcmask 1039360  }
  0x29   : > { %215 = vst [vmem:[#allocation3 + $0x4] sm:$0xf] %v213_v4  ;;  %524 = vset.pattern.permute.xlu0 %v635_v6  ;;  %v250_v22 = vld [vmem:[%s791_s1] sm:$0xf]  ;;  %vm281_vm3 = vcmask 392192   ;;  %s441_s7 = sshll.u32 %s620_s15, 7 }
  0x2a   : > { %s341_s8 = sshll.u32 %s136_s23, 4  ;;  %s740_s11 = scalar_lea.hbm %s793_s3, %s441_s7  ;;  %s742_s8 = int_to_ptr.vmem [resolvable:$true] %s341_s8 }
  0x2b   : > { %239 = vrot.lane.b32.xlu0 %v234_v2, %s632_s27  ;;  %s327_s15 = scalar_lea.sflag [#allocation6], %s134_s26  ;;  %s550_s18 = scalar_lea.vmem %s742_s8, 128 }
  0x2c   : > { %222 = vrot.lane.b32.xlu1 %v234_v2, %s633_s29  ;;  %p551_p9 = scmp.ne.s32.totalorder %s742_s8, %s550_s18  ;;  %s636_s19 = smov [#allocation5]  }
  0x2d   : > { %s554_s21 = sshll.u32 %s636_s19, 4  ;;  %s555_s21 = int_to_ptr.vmem [resolvable:$false] %s554_s21 }
  0x2e   : > { %p552_p10 = pnand %p551_p9, %p697_p4  ;;  %s556_s27 = scalar_lea.vmem %s555_s21, 256 }
  0x2f   : > { %260 = vperm.xlu0 %524, %v257_v5   ;;  %p557_p12 = scmp.lt.s32.totalorder %s742_s8, %s555_s21  ;;  %p558_p13 = scmp.lt.s32.totalorder %s556_s27, %s550_s18 }
  0x30   : > { %v527_v21 = vld [vmem:[#allocation3] sm:$0xff]   ;;  %p553_p11 = pneg %p552_p10 }
  0x31   : > { %p559_p0 = por %p558_p13, %p557_p12 }
  0x33   : > { %p560_p1 = pnand %p559_p0, %p553_p11 }
  0x99   : > { %v238_v7 = vpop.permute.xlu0 %237 }
  0x9a   : > { %v221_v8 = vpop.permute.xlu1 %220  ;;  %v241_v9 = vrot.slane %v238_v7, 4 }
  0x9b   : > { %v224_v10 = vrot.slane %v221_v8, 4 }
  0x9c   : > { %v244_v11 = vsel %vm243_vm1, %v238_v7, %v241_v9 }
  0x9d   : > { %v227_v12 = vsel %vm226_vm2, %v221_v8, %v224_v10  ;;  %248 = vst [vmem:[#allocation3 + $0x10] sm:$0xf] %v244_v11  ;;  %v240_v13 = vpop.permute.xlu0 %239 }
  0x9e   : > { %231 = vst [vmem:[#allocation3 + $0x8] sm:$0xf] %v227_v12  ;;  %v223_v14 = vpop.permute.xlu1 %222  ;;  %v242_v15 = vrot.slane %v240_v13, 4 }
  0x9f   : > { %v225_v16 = vrot.slane %v223_v14, 4 }
  0xa0   : > { %v245_v17 = vsel %vm243_vm1, %v240_v13, %v242_v15 }
  0xa1   : > { %v228_v18 = vsel %vm226_vm2, %v223_v14, %v225_v16  ;;  %249 = vst [vmem:[#allocation3 + $0x14] sm:$0xf] %v245_v17 }
  0xa2   : > { %232 = vst [vmem:[#allocation3 + $0xc] sm:$0xf] %v228_v18 }
  0xa8   : > { %v525_v19 = vld [vmem:[#allocation3 + $0x10] sm:$0xff]  }
  0xa9   : > { %454 = vmatpush3.bf16.msra.mxu0 %v525_v19  ;;  %v526_v20 = vld [vmem:[#allocation3 + $0x8] sm:$0xff]  }
  0xaa   : > { %455 = vmatprep.subr.bf16.mxu0 %v631_v0  ;;  %v261_v23 = vpop.permute.xlu0 %260 }
  0xad   : > { %456 = vmatpush3.bf16.msra.mxu0 %v526_v20 }
  0xae   : > { %457 = vmatprep.subr.bf16.mxu0 %v631_v0 }
  0xb1   : > { %458 = vmatpush3.bf16.msra.mxu0 %v527_v21 }
  0xb4   : > { %460 = vmatmul.mubr.msk.bf16.vlgmr.msra.gmra.mxu0 %vm281_vm3, %v250_v22 }
 0x174   : > { %v319_v24 = vpop.f32.mrf.mxu0 }
 0x175   : > { %v320_v25 = vadd.f32 %v319_v24, %v261_v23 }
 0x176   : > { %v461_v26 = vpop.f32.mrf.mxu0 }
 0x177   : > { %325 = vst [vmem:[%s136_s23] sm:$0xff] %v320_v25 }
 0x178   : > { %v322_v27 = vpop.f32.mrf.mxu0 }
 0x179   : > { %563 = shalt.err (!%p560_p1)
}
 0x17a   : > { %s564_s28 = scalar_lea.hbm %s740_s11, 128  ;;  %s568_s29 = scalar_lea.hbm %s793_s3, 256 }
 0x17b   : > { %p565_p2 = scmp.ne.s32.totalorder %s740_s11, %s564_s28  ;;  %p569_p6 = scmp.lt.s32.totalorder %s740_s11, %s793_s3 }
 0x17c   : > { %p570_p7 = scmp.lt.s32.totalorder %s568_s29, %s564_s28 }
 0x17d   : > { %p566_p3 = pnand %p565_p2, %p697_p4 }
 0x17e   : > { %p571_p9 = por %p570_p7, %p569_p6 }
 0x17f   : > { %p567_p5 = pneg %p566_p3 }
 0x181   : > { %p572_p10 = pnand %p571_p9, %p567_p5 }
 0x183   : > { %575 = shalt.err (!%p572_p10)
}
 0x184   : > { %463 = dma.vmem_to_hbm [thread:$0]  (%p697_p4), %s742_s8, 128, %s740_s11, %s327_s15   ;;  %v462_v28 = vpop.f32.mrf.mxu0 }
 0x185 PF: > { %p469_p11 = scmp.ge.s32.totalorder %s628_s17, 2  ;;  %s353_s5 = sand.u32 1, %s608_s12  }
 0x186   : > { %s354_s6 = scalar_lea.sflag [#allocation6], %s353_s5 }
 0x187   : > { %p466_p12 = pnand %p469_p11, %p704_p8 }
 0x189   : > { %p467_p13 = pneg %p466_p12 }
 0x18b   : > { %603 = dma.done.wait (%p467_p13), %s354_s6, 128  }
 0x18c   : > { %605 = vsyncadd (%p467_p13), %s354_s6, 4294967168  ;;  %s16_s17 = sadd.s32 1, %s628_s17   ;;  %s796_s12 = smov %s612_s13 }
 0x18d   : > { %p13_p0 = scmp.ge.s32.totalorder %s16_s17, 4   ;;  %s797_s13 = smov %s616_s14 }
 0x18e   : > { %s798_s14 = smov %s710_s25  ;;  %s799_s15 = smov %s624_s16 }
 0x18f   : > { %s800_s16 = smov %s802_s20  ;;  %15 = sbr.rel (!%p13_p0) target bundleno = 4 (0x4), region = 85 }
 0x194   :  { %359 = vsyncpa [#allocation6], 1 }
 0x195   :  { %361 = vsyncpa [#allocation6 + $0x1], 1 }
 0x196   :  { %362 = vsyncmov [#allocation4] }
 0x199   :  { %s363_s22 = vpop.sfrf %362 }
 0x19a   :  { %p444_p4 = scmp.ne.s32.totalorder %s363_s22, 0 }
 0x19c   :  { %367 = shalt.err (%p444_p4)  }
 0x19d   :  { %369 = vsyncmov [#allocation4 + $0x1] }
 0x1a0   :  { %s370_s24 = vpop.sfrf %369 }
 0x1a1   :  { %p445_p8 = scmp.ne.s32.totalorder %s370_s24, 0 }
 0x1a3   :  { %374 = shalt.err (%p445_p8)  }

</bundles_post_ra>
